<compile_context>
chip_gen: v6e
topology: v6e:2x2x1
jax: 0.10.0
libtpu: 0.0.40
codegen_flags: <defaults>
</compile_context>

<pallas_src>
import functools

import jax
import jax.numpy as jnp
from jax.experimental import pallas as pl
from jax.experimental.pallas import tpu as pltpu


def _residual_block_kernel(x_ref, w1_ref, b1_ref, w2_ref, b2_ref, mask_ref,
                           out_ref, *, W):
    # x_ref:    (PC, L)     P sublane-packed images x (images_per_chunk*HW) lanes
    # w*_ref:   (PC, 9*PC)  fused tap-major, per-tap block-diagonal weights
    # b*_ref:   (PC, 1)     per-channel bias replicated for the P packed images
    # mask_ref: (9, 1, L)   0/1 in-image validity per tap (image-periodic)
    # out_ref:  (PC, L)
    PC, L = x_ref.shape

    x = x_ref[...].astype(jnp.float32)

    def conv3x3(inp, w_ref, b_ref):
        taps = []
        for k in range(9):                       # static unroll: 9 taps
            sh, sw = k // 3 - 1, k % 3 - 1       # spatial offsets in {-1, 0, 1}
            s = sh * W + sw                      # flattened lane shift
            if s == 0:
                shifted = inp
            else:
                # shifted[p] = inp[(p + s) mod L]  (XLU lane rotation)
                shifted = pltpu.roll(inp, (-s) % L, 1)
            if not (sh == 0 and sw == 0):
                shifted = shifted * mask_ref[k]  # zero out-of-image / cross-image
            taps.append(shifted)
        # (9*PC, L): each piece is 8 sublanes -> tile-aligned concat, then one
        # fused matmul replaces 9 accumulating dots.
        stacked = jnp.concatenate(taps, axis=0)
        return jnp.dot(w_ref[...], stacked,
                       preferred_element_type=jnp.float32) + b_ref[...]

    y = jnp.maximum(conv3x3(x, w1_ref, b1_ref), 0.0)   # conv1 + ReLU
    z = conv3x3(y, w2_ref, b2_ref)                     # conv2 (masking == re-pad)
    out_ref[...] = jnp.maximum(x + z, 0.0).astype(out_ref.dtype)


@jax.jit
def residual_block(x_nchw, w1, b1, w2, b2):
    """x_nchw: (N, C, H, W) float32. w*: (Cout, Cin, 3, 3). b*: (C,)."""
    N, C, H, W = x_nchw.shape
    HW = H * W

    # --- pack the batch: P images along sublanes, the rest along lanes -------
    P = 2 if N % 2 == 0 else 1       # fills all 8 f32 sublanes when C=4
    n_pair = N // P
    PC = P * C

    # (N,C,H,W) -> (n_pair, P, C, HW) -> (P, C, n_pair, HW) -> (PC, n_pair*HW)
    x_slab = (x_nchw.reshape(n_pair, P, C, HW)
                     .transpose(1, 2, 0, 3)
                     .reshape(PC, n_pair * HW))

    # Grid: one fat step normally; 2 "parallel" chunks when the batch allows it
    # so both v7x TensorCores get work (costs ~0.35us extra on v5e/v6e).
    n_chunks = 2 if (n_pair >= 2 and n_pair % 2 == 0) else 1
    imgs_per_chunk = n_pair // n_chunks
    L = imgs_per_chunk * HW
    if n_chunks > 1 and L % 128 != 0:
        n_chunks, imgs_per_chunk, L = 1, n_pair, n_pair * HW

    # --- fused, per-tap block-diagonal weights: (PC, 9*PC) -------------------
    def fuse_weights(w):
        # PyTorch (Cout, Cin, kh, kw) -> tap-major (9, Cout, Cin), k = kh*3 + kw
        w_tap = jnp.transpose(w, (2, 3, 0, 1)).reshape(9, C, C)
        eye_p = jnp.eye(P, dtype=w.dtype)
        # per-tap block diag over the P sublane-packed images: (9, PC, PC)
        w_bd = jnp.einsum('pq,koc->kpoqc', eye_p, w_tap).reshape(9, PC, PC)
        # tap-major columns: W_fused[:, k*PC:(k+1)*PC] = w_bd[k]
        return jnp.transpose(w_bd, (1, 0, 2)).reshape(PC, 9 * PC)

    w1_f, w2_f = fuse_weights(w1), fuse_weights(w2)
    b1_p = jnp.tile(b1, P).reshape(PC, 1)
    b2_p = jnp.tile(b2, P).reshape(PC, 1)

    # --- image-periodic border masks, tiled to one chunk's lane extent -------
    p = jnp.arange(HW)
    hh, ww = p // W, p % W
    masks = []
    for k in range(9):
        sh, sw = k // 3 - 1, k % 3 - 1
        valid = (hh + sh >= 0) & (hh + sh < H) & (ww + sw >= 0) & (ww + sw < W)
        masks.append(valid)
    mask = jnp.stack(masks).astype(jnp.float32)                  # (9, HW)
    mask = jnp.tile(mask, (1, imgs_per_chunk)).reshape(9, 1, L)  # (9, 1, L)

    out_slab = pl.pallas_call(
        functools.partial(_residual_block_kernel, W=W),
        out_shape=jax.ShapeDtypeStruct((PC, n_pair * HW), x_nchw.dtype),
        grid=(n_chunks,),
        in_specs=[
            pl.BlockSpec((PC, L), lambda i: (0, i)),        # x chunk
            pl.BlockSpec((PC, 9 * PC), lambda i: (0, 0)),   # w1 (resident)
            pl.BlockSpec((PC, 1), lambda i: (0, 0)),        # b1
            pl.BlockSpec((PC, 9 * PC), lambda i: (0, 0)),   # w2
            pl.BlockSpec((PC, 1), lambda i: (0, 0)),        # b2
            pl.BlockSpec((9, 1, L), lambda i: (0, 0, 0)),   # border masks
        ],
        out_specs=pl.BlockSpec((PC, L), lambda i: (0, i)),
        compiler_params=pltpu.CompilerParams(
            dimension_semantics=("parallel",)),
    )(x_slab, w1_f, b1_p, w2_f, b2_p, mask)

    # unpack: (PC, n_pair*HW) -> (P, C, n_pair, HW) -> (N, C, H, W)
    return (out_slab.reshape(P, C, n_pair, HW)
                    .transpose(2, 0, 1, 3)
                    .reshape(N, C, H, W))


def _reference(x_nchw, w1, b1, w2, b2):
    """Pure-JAX reference using lax conv (NCHW, same semantics as PyTorch)."""
    dn = jax.lax.conv_dimension_numbers(x_nchw.shape, w1.shape,
                                        ("NCHW", "OIHW", "NCHW"))
    y = jax.lax.conv_general_dilated(x_nchw, w1, (1, 1), ((1, 1), (1, 1)),
                                     dimension_numbers=dn)
    y = jnp.maximum(y + b1[None, :, None, None], 0.0)
    y = jax.lax.conv_general_dilated(y, w2, (1, 1), ((1, 1), (1, 1)),
                                     dimension_numbers=dn)
    y = y + b2[None, :, None, None]
    return jnp.maximum(x_nchw + y, 0.0)


if __name__ == "__main__":
    N, C, H, W = 2, 4, 16, 16

    key = jax.random.PRNGKey(0)
    kx, kw1, kb1, kw2, kb2 = jax.random.split(key, 5)

    x = jax.random.normal(kx, (N, C, H, W), jnp.float32)

    # Init mimicking nn.Conv2d's uniform(-1/sqrt(fan_in), 1/sqrt(fan_in))
    fan_in = C * 3 * 3
    bound = 1.0 / jnp.sqrt(fan_in)
    w1 = jax.random.uniform(kw1, (C, C, 3, 3), jnp.float32, -bound, bound)
    b1 = jax.random.uniform(kb1, (C,), jnp.float32, -bound, bound)
    w2 = jax.random.uniform(kw2, (C, C, 3, 3), jnp.float32, -bound, bound)
    b2 = jax.random.uniform(kb2, (C,), jnp.float32, -bound, bound)

    out = jax.block_until_ready(residual_block(x, w1, b1, w2, b2))
    ref = jax.block_until_ready(_reference(x, w1, b1, w2, b2))

    assert out.shape == (N, C, H, W)
    assert jnp.allclose(out, ref, atol=1e-4, rtol=1e-4)

    print("KERNEL_OK")
</pallas_src>

<mosaic_0001>
module attributes {stable_mosaic.version = 11 : i64} {
  func.func @_residual_block_kernel(%arg0: i32, %arg1: memref<8x256xf32, #tpu.memory_space<vmem>>, %arg2: memref<8x72xf32, #tpu.memory_space<vmem>>, %arg3: memref<8x1xf32, #tpu.memory_space<vmem>>, %arg4: memref<8x72xf32, #tpu.memory_space<vmem>>, %arg5: memref<8x1xf32, #tpu.memory_space<vmem>>, %arg6: memref<9x1x256xf32, #tpu.memory_space<vmem>>, %arg7: memref<8x256xf32, #tpu.memory_space<vmem>>) attributes {dimension_semantics = [#tpu.dimension_semantics<parallel>], iteration_bounds = array<i64: 1>, scalar_prefetch = 0 : i64, scratch_operands = 0 : i64, tpu.core_type = #tpu.core_type<tc>, window_params = [{transform_indices = @transform_0, window_bounds = array<i64: 8, 256>}, {pipeline_mode = #tpu.pipeline_mode<synchronous>, transform_indices = @transform_1, window_bounds = array<i64: 8, 72>}, {pipeline_mode = #tpu.pipeline_mode<synchronous>, transform_indices = @transform_2, window_bounds = array<i64: 8, 1>}, {pipeline_mode = #tpu.pipeline_mode<synchronous>, transform_indices = @transform_3, window_bounds = array<i64: 8, 72>}, {pipeline_mode = #tpu.pipeline_mode<synchronous>, transform_indices = @transform_4, window_bounds = array<i64: 8, 1>}, {pipeline_mode = #tpu.pipeline_mode<synchronous>, transform_indices = @transform_5, window_bounds = array<i64: 9, 1, 256>}, {transform_indices = @transform_6, window_bounds = array<i64: 8, 256>}]} {
    %c0 = arith.constant 0 : index
    %c0_0 = arith.constant 0 : index
    %0 = vector.load %arg1[%c0, %c0_0] : memref<8x256xf32, #tpu.memory_space<vmem>>, vector<8x256xf32>
    %c17_i32 = arith.constant 17 : i32
    %1 = tpu.dynamic_rotate %0 by %c17_i32 dim 1 : vector<8x256xf32>, i32 -> vector<8x256xf32>
    %c0_1 = arith.constant 0 : index
    %c0_2 = arith.constant 0 : index
    %c0_3 = arith.constant 0 : index
    %2 = vector.load %arg6[%c0_1, %c0_2, %c0_3] : memref<9x1x256xf32, #tpu.memory_space<vmem>>, vector<1x1x256xf32>
    %3 = vector.shape_cast %2 : vector<1x1x256xf32> to vector<1x256xf32>
    %4 = vector.broadcast %3 : vector<1x256xf32> to vector<8x256xf32>
    %5 = arith.mulf %1, %4 : vector<8x256xf32>
    %c16_i32 = arith.constant 16 : i32
    %6 = tpu.dynamic_rotate %0 by %c16_i32 dim 1 : vector<8x256xf32>, i32 -> vector<8x256xf32>
    %c1 = arith.constant 1 : index
    %c0_4 = arith.constant 0 : index
    %c0_5 = arith.constant 0 : index
    %7 = vector.load %arg6[%c1, %c0_4, %c0_5] : memref<9x1x256xf32, #tpu.memory_space<vmem>>, vector<1x1x256xf32>
    %8 = vector.shape_cast %7 : vector<1x1x256xf32> to vector<1x256xf32>
    %9 = vector.broadcast %8 : vector<1x256xf32> to vector<8x256xf32>
    %10 = arith.mulf %6, %9 : vector<8x256xf32>
    %c15_i32 = arith.constant 15 : i32
    %11 = tpu.dynamic_rotate %0 by %c15_i32 dim 1 : vector<8x256xf32>, i32 -> vector<8x256xf32>
    %c2 = arith.constant 2 : index
    %c0_6 = arith.constant 0 : index
    %c0_7 = arith.constant 0 : index
    %12 = vector.load %arg6[%c2, %c0_6, %c0_7] : memref<9x1x256xf32, #tpu.memory_space<vmem>>, vector<1x1x256xf32>
    %13 = vector.shape_cast %12 : vector<1x1x256xf32> to vector<1x256xf32>
    %14 = vector.broadcast %13 : vector<1x256xf32> to vector<8x256xf32>
    %15 = arith.mulf %11, %14 : vector<8x256xf32>
    %c1_i32 = arith.constant 1 : i32
    %16 = tpu.dynamic_rotate %0 by %c1_i32 dim 1 : vector<8x256xf32>, i32 -> vector<8x256xf32>
    %c3 = arith.constant 3 : index
    %c0_8 = arith.constant 0 : index
    %c0_9 = arith.constant 0 : index
    %17 = vector.load %arg6[%c3, %c0_8, %c0_9] : memref<9x1x256xf32, #tpu.memory_space<vmem>>, vector<1x1x256xf32>
    %18 = vector.shape_cast %17 : vector<1x1x256xf32> to vector<1x256xf32>
    %19 = vector.broadcast %18 : vector<1x256xf32> to vector<8x256xf32>
    %20 = arith.mulf %16, %19 : vector<8x256xf32>
    %c255_i32 = arith.constant 255 : i32
    %21 = tpu.dynamic_rotate %0 by %c255_i32 dim 1 : vector<8x256xf32>, i32 -> vector<8x256xf32>
    %c5 = arith.constant 5 : index
    %c0_10 = arith.constant 0 : index
    %c0_11 = arith.constant 0 : index
    %22 = vector.load %arg6[%c5, %c0_10, %c0_11] : memref<9x1x256xf32, #tpu.memory_space<vmem>>, vector<1x1x256xf32>
    %23 = vector.shape_cast %22 : vector<1x1x256xf32> to vector<1x256xf32>
    %24 = vector.broadcast %23 : vector<1x256xf32> to vector<8x256xf32>
    %25 = arith.mulf %21, %24 : vector<8x256xf32>
    %c241_i32 = arith.constant 241 : i32
    %26 = tpu.dynamic_rotate %0 by %c241_i32 dim 1 : vector<8x256xf32>, i32 -> vector<8x256xf32>
    %c6 = arith.constant 6 : index
    %c0_12 = arith.constant 0 : index
    %c0_13 = arith.constant 0 : index
    %27 = vector.load %arg6[%c6, %c0_12, %c0_13] : memref<9x1x256xf32, #tpu.memory_space<vmem>>, vector<1x1x256xf32>
    %28 = vector.shape_cast %27 : vector<1x1x256xf32> to vector<1x256xf32>
    %29 = vector.broadcast %28 : vector<1x256xf32> to vector<8x256xf32>
    %30 = arith.mulf %26, %29 : vector<8x256xf32>
    %c240_i32 = arith.constant 240 : i32
    %31 = tpu.dynamic_rotate %0 by %c240_i32 dim 1 : vector<8x256xf32>, i32 -> vector<8x256xf32>
    %c7 = arith.constant 7 : index
    %c0_14 = arith.constant 0 : index
    %c0_15 = arith.constant 0 : index
    %32 = vector.load %arg6[%c7, %c0_14, %c0_15] : memref<9x1x256xf32, #tpu.memory_space<vmem>>, vector<1x1x256xf32>
    %33 = vector.shape_cast %32 : vector<1x1x256xf32> to vector<1x256xf32>
    %34 = vector.broadcast %33 : vector<1x256xf32> to vector<8x256xf32>
    %35 = arith.mulf %31, %34 : vector<8x256xf32>
    %c239_i32 = arith.constant 239 : i32
    %36 = tpu.dynamic_rotate %0 by %c239_i32 dim 1 : vector<8x256xf32>, i32 -> vector<8x256xf32>
    %c8 = arith.constant 8 : index
    %c0_16 = arith.constant 0 : index
    %c0_17 = arith.constant 0 : index
    %37 = vector.load %arg6[%c8, %c0_16, %c0_17] : memref<9x1x256xf32, #tpu.memory_space<vmem>>, vector<1x1x256xf32>
    %38 = vector.shape_cast %37 : vector<1x1x256xf32> to vector<1x256xf32>
    %39 = vector.broadcast %38 : vector<1x256xf32> to vector<8x256xf32>
    %40 = arith.mulf %36, %39 : vector<8x256xf32>
    %41 = tpu.concatenate %5, %10, %15, %20, %0, %25, %30, %35, %40 in 0 : vector<8x256xf32>, vector<8x256xf32>, vector<8x256xf32>, vector<8x256xf32>, vector<8x256xf32>, vector<8x256xf32>, vector<8x256xf32>, vector<8x256xf32>, vector<8x256xf32> -> vector<72x256xf32>
    %c0_18 = arith.constant 0 : index
    %c0_19 = arith.constant 0 : index
    %42 = vector.load %arg2[%c0_18, %c0_19] : memref<8x72xf32, #tpu.memory_space<vmem>>, vector<8x72xf32>
    %cst = arith.constant dense<0.000000e+00> : vector<8x256xf32>
    %43 = tpu.matmul %42, %41, %cst {dimension_numbers = #tpu.dot_dimension_numbers<[1], [0], [0], [1], [0, 0, 1, 1], [], []>} : vector<8x72xf32>, vector<72x256xf32>, vector<8x256xf32> -> vector<8x256xf32>
    %c0_20 = arith.constant 0 : index
    %c0_21 = arith.constant 0 : index
    %44 = vector.load %arg3[%c0_20, %c0_21] : memref<8x1xf32, #tpu.memory_space<vmem>>, vector<8x1xf32>
    %45 = vector.broadcast %44 : vector<8x1xf32> to vector<8x256xf32>
    %46 = arith.addf %43, %45 : vector<8x256xf32>
    %cst_22 = arith.constant 0.000000e+00 : f32
    %47 = vector.broadcast %cst_22 : f32 to vector<8x256xf32>
    %48 = arith.maximumf %46, %47 : vector<8x256xf32>
    %c17_i32_23 = arith.constant 17 : i32
    %49 = tpu.dynamic_rotate %48 by %c17_i32_23 dim 1 : vector<8x256xf32>, i32 -> vector<8x256xf32>
    %c0_24 = arith.constant 0 : index
    %c0_25 = arith.constant 0 : index
    %c0_26 = arith.constant 0 : index
    %50 = vector.load %arg6[%c0_24, %c0_25, %c0_26] : memref<9x1x256xf32, #tpu.memory_space<vmem>>, vector<1x1x256xf32>
    %51 = vector.shape_cast %50 : vector<1x1x256xf32> to vector<1x256xf32>
    %52 = vector.broadcast %51 : vector<1x256xf32> to vector<8x256xf32>
    %53 = arith.mulf %49, %52 : vector<8x256xf32>
    %c16_i32_27 = arith.constant 16 : i32
    %54 = tpu.dynamic_rotate %48 by %c16_i32_27 dim 1 : vector<8x256xf32>, i32 -> vector<8x256xf32>
    %c1_28 = arith.constant 1 : index
    %c0_29 = arith.constant 0 : index
    %c0_30 = arith.constant 0 : index
    %55 = vector.load %arg6[%c1_28, %c0_29, %c0_30] : memref<9x1x256xf32, #tpu.memory_space<vmem>>, vector<1x1x256xf32>
    %56 = vector.shape_cast %55 : vector<1x1x256xf32> to vector<1x256xf32>
    %57 = vector.broadcast %56 : vector<1x256xf32> to vector<8x256xf32>
    %58 = arith.mulf %54, %57 : vector<8x256xf32>
    %c15_i32_31 = arith.constant 15 : i32
    %59 = tpu.dynamic_rotate %48 by %c15_i32_31 dim 1 : vector<8x256xf32>, i32 -> vector<8x256xf32>
    %c2_32 = arith.constant 2 : index
    %c0_33 = arith.constant 0 : index
    %c0_34 = arith.constant 0 : index
    %60 = vector.load %arg6[%c2_32, %c0_33, %c0_34] : memref<9x1x256xf32, #tpu.memory_space<vmem>>, vector<1x1x256xf32>
    %61 = vector.shape_cast %60 : vector<1x1x256xf32> to vector<1x256xf32>
    %62 = vector.broadcast %61 : vector<1x256xf32> to vector<8x256xf32>
    %63 = arith.mulf %59, %62 : vector<8x256xf32>
    %c1_i32_35 = arith.constant 1 : i32
    %64 = tpu.dynamic_rotate %48 by %c1_i32_35 dim 1 : vector<8x256xf32>, i32 -> vector<8x256xf32>
    %c3_36 = arith.constant 3 : index
    %c0_37 = arith.constant 0 : index
    %c0_38 = arith.constant 0 : index
    %65 = vector.load %arg6[%c3_36, %c0_37, %c0_38] : memref<9x1x256xf32, #tpu.memory_space<vmem>>, vector<1x1x256xf32>
    %66 = vector.shape_cast %65 : vector<1x1x256xf32> to vector<1x256xf32>
    %67 = vector.broadcast %66 : vector<1x256xf32> to vector<8x256xf32>
    %68 = arith.mulf %64, %67 : vector<8x256xf32>
    %c255_i32_39 = arith.constant 255 : i32
    %69 = tpu.dynamic_rotate %48 by %c255_i32_39 dim 1 : vector<8x256xf32>, i32 -> vector<8x256xf32>
    %c5_40 = arith.constant 5 : index
    %c0_41 = arith.constant 0 : index
    %c0_42 = arith.constant 0 : index
    %70 = vector.load %arg6[%c5_40, %c0_41, %c0_42] : memref<9x1x256xf32, #tpu.memory_space<vmem>>, vector<1x1x256xf32>
    %71 = vector.shape_cast %70 : vector<1x1x256xf32> to vector<1x256xf32>
    %72 = vector.broadcast %71 : vector<1x256xf32> to vector<8x256xf32>
    %73 = arith.mulf %69, %72 : vector<8x256xf32>
    %c241_i32_43 = arith.constant 241 : i32
    %74 = tpu.dynamic_rotate %48 by %c241_i32_43 dim 1 : vector<8x256xf32>, i32 -> vector<8x256xf32>
    %c6_44 = arith.constant 6 : index
    %c0_45 = arith.constant 0 : index
    %c0_46 = arith.constant 0 : index
    %75 = vector.load %arg6[%c6_44, %c0_45, %c0_46] : memref<9x1x256xf32, #tpu.memory_space<vmem>>, vector<1x1x256xf32>
    %76 = vector.shape_cast %75 : vector<1x1x256xf32> to vector<1x256xf32>
    %77 = vector.broadcast %76 : vector<1x256xf32> to vector<8x256xf32>
    %78 = arith.mulf %74, %77 : vector<8x256xf32>
    %c240_i32_47 = arith.constant 240 : i32
    %79 = tpu.dynamic_rotate %48 by %c240_i32_47 dim 1 : vector<8x256xf32>, i32 -> vector<8x256xf32>
    %c7_48 = arith.constant 7 : index
    %c0_49 = arith.constant 0 : index
    %c0_50 = arith.constant 0 : index
    %80 = vector.load %arg6[%c7_48, %c0_49, %c0_50] : memref<9x1x256xf32, #tpu.memory_space<vmem>>, vector<1x1x256xf32>
    %81 = vector.shape_cast %80 : vector<1x1x256xf32> to vector<1x256xf32>
    %82 = vector.broadcast %81 : vector<1x256xf32> to vector<8x256xf32>
    %83 = arith.mulf %79, %82 : vector<8x256xf32>
    %c239_i32_51 = arith.constant 239 : i32
    %84 = tpu.dynamic_rotate %48 by %c239_i32_51 dim 1 : vector<8x256xf32>, i32 -> vector<8x256xf32>
    %c8_52 = arith.constant 8 : index
    %c0_53 = arith.constant 0 : index
    %c0_54 = arith.constant 0 : index
    %85 = vector.load %arg6[%c8_52, %c0_53, %c0_54] : memref<9x1x256xf32, #tpu.memory_space<vmem>>, vector<1x1x256xf32>
    %86 = vector.shape_cast %85 : vector<1x1x256xf32> to vector<1x256xf32>
    %87 = vector.broadcast %86 : vector<1x256xf32> to vector<8x256xf32>
    %88 = arith.mulf %84, %87 : vector<8x256xf32>
    %89 = tpu.concatenate %53, %58, %63, %68, %48, %73, %78, %83, %88 in 0 : vector<8x256xf32>, vector<8x256xf32>, vector<8x256xf32>, vector<8x256xf32>, vector<8x256xf32>, vector<8x256xf32>, vector<8x256xf32>, vector<8x256xf32>, vector<8x256xf32> -> vector<72x256xf32>
    %c0_55 = arith.constant 0 : index
    %c0_56 = arith.constant 0 : index
    %90 = vector.load %arg4[%c0_55, %c0_56] : memref<8x72xf32, #tpu.memory_space<vmem>>, vector<8x72xf32>
    %cst_57 = arith.constant dense<0.000000e+00> : vector<8x256xf32>
    %91 = tpu.matmul %90, %89, %cst_57 {dimension_numbers = #tpu.dot_dimension_numbers<[1], [0], [0], [1], [0, 0, 1, 1], [], []>} : vector<8x72xf32>, vector<72x256xf32>, vector<8x256xf32> -> vector<8x256xf32>
    %c0_58 = arith.constant 0 : index
    %c0_59 = arith.constant 0 : index
    %92 = vector.load %arg5[%c0_58, %c0_59] : memref<8x1xf32, #tpu.memory_space<vmem>>, vector<8x1xf32>
    %93 = vector.broadcast %92 : vector<8x1xf32> to vector<8x256xf32>
    %94 = arith.addf %91, %93 : vector<8x256xf32>
    %95 = arith.addf %0, %94 : vector<8x256xf32>
    %cst_60 = arith.constant 0.000000e+00 : f32
    %96 = vector.broadcast %cst_60 : f32 to vector<8x256xf32>
    %97 = arith.maximumf %95, %96 : vector<8x256xf32>
    %c0_61 = arith.constant 0 : index
    %c0_62 = arith.constant 0 : index
    %98 = vector.load %arg7[%c0_61, %c0_62] : memref<8x256xf32, #tpu.memory_space<vmem>>, vector<8x256xf32>
    tpu.vector_store %arg7[%c0_61, %c0_62], %97 {strides = array<i32>} : memref<8x256xf32, #tpu.memory_space<vmem>>, vector<8x256xf32>,
    return
  }
  func.func @transform_0(%arg0: i32) -> (i32, i32) {
    %c0_i32 = arith.constant 0 : i32
    %c0_i32_0 = arith.constant 0 : i32
    return %c0_i32, %arg0 : i32, i32
  }
  func.func @transform_1(%arg0: i32) -> (i32, i32) {
    %c0_i32 = arith.constant 0 : i32
    %c0_i32_0 = arith.constant 0 : i32
    %c0_i32_1 = arith.constant 0 : i32
    return %c0_i32, %c0_i32_0 : i32, i32
  }
  func.func @transform_2(%arg0: i32) -> (i32, i32) {
    %c0_i32 = arith.constant 0 : i32
    %c0_i32_0 = arith.constant 0 : i32
    %c0_i32_1 = arith.constant 0 : i32
    return %c0_i32, %c0_i32_0 : i32, i32
  }
  func.func @transform_3(%arg0: i32) -> (i32, i32) {
    %c0_i32 = arith.constant 0 : i32
    %c0_i32_0 = arith.constant 0 : i32
    %c0_i32_1 = arith.constant 0 : i32
    return %c0_i32, %c0_i32_0 : i32, i32
  }
  func.func @transform_4(%arg0: i32) -> (i32, i32) {
    %c0_i32 = arith.constant 0 : i32
    %c0_i32_0 = arith.constant 0 : i32
    %c0_i32_1 = arith.constant 0 : i32
    return %c0_i32, %c0_i32_0 : i32, i32
  }
  func.func @transform_5(%arg0: i32) -> (i32, i32, i32) {
    %c0_i32 = arith.constant 0 : i32
    %c0_i32_0 = arith.constant 0 : i32
    %c0_i32_1 = arith.constant 0 : i32
    %c0_i32_2 = arith.constant 0 : i32
    return %c0_i32, %c0_i32_0, %c0_i32_1 : i32, i32, i32
  }
  func.func @transform_6(%arg0: i32) -> (i32, i32) {
    %c0_i32 = arith.constant 0 : i32
    %c0_i32_0 = arith.constant 0 : i32
    return %c0_i32, %arg0 : i32, i32
  }
}

</mosaic_0001>

<bundles_post_ra>
// kernel: tile.0
= control target key start
LH: loop header
LB: loop body
LE: loop exit
PB: predicated region body
PF: predicated region fallthrough
CT: control target
= control target key end

     0   :  { %s35_s8 = smov 125   ;;  %vm8_vm0 = vcmask 7168   ;;  %s36_s11 = smov 126   ;;  %s62_s0 = inlined_call_operand.vmem [shape: f32[2,4], index: 0, kind: input, shape index: {}]   ;;  %s63_s1 = inlined_call_operand.vmem [shape: f32[8,1], index: 1, kind: output, shape index: {}]  }
   0x1   :  { %v5_v0 = vld [vmem:[%s62_s0] sm:$0x3]  ;;  %s34_s0 = smov 127  }
   0x2   :  { %6 = vst [vmem:[#allocation0] sm:$0x3] %v5_v0 }
   0x9   :  { %v10_v1 = vld [vmem:[#allocation0] sm:$0x3]  }
   0xa   :  { %v22_v2 = vld [vmem:[#allocation0] sm:$0x3]   ;;  %11 = vrot.lane.b32.xlu0 %v10_v1, %s34_s0 }
   0xb   :  { %23 = vrot.lane.b32.xlu1 %v22_v2, %s35_s8  ;;  %v7_v3 = vld [vmem:[#allocation0] sm:$0x3]  }
   0xc   :  { %v16_v4 = vld [vmem:[#allocation0] sm:$0x3]   ;;  %9 = vst.msk [vmem:[%s63_s1] ss:$4 sm:$0x3] %vm8_vm0, %v7_v3  }
   0xe   :  { %17 = vrot.lane.b32.xlu0 %v16_v4, %s36_s11 }
  0x7c   :  { %v12_v5 = vpop.permute.xlu0 %11  }
  0x7d   :  { %v24_v6 = vpop.permute.xlu1 %23   ;;  %28 = vst.msk [vmem:[%s63_s1 + $0x1] ss:$4 sm:$0x3] %vm8_vm0, %v12_v5  }
  0x7e   :  { %30 = vst.msk [vmem:[%s63_s1 + $0x3] ss:$4 sm:$0x3] %vm8_vm0, %v24_v6  }
  0x80   :  { %v18_v7 = vpop.permute.xlu0 %17  }
  0x81   :  { %29 = vst.msk [vmem:[%s63_s1 + $0x2] ss:$4 sm:$0x3] %vm8_vm0, %v18_v7  }

// kernel: tile.14
= control target key start
LH: loop header
LB: loop body
LE: loop exit
PB: predicated region body
PF: predicated region fallthrough
CT: control target
= control target key end

     0   :  { %s22_s0 = inlined_call_operand.vmem [shape: f32[4], index: 0, kind: input, shape index: {}]   ;;  %s23_s1 = inlined_call_operand.vmem [shape: f32[2,4], index: 1, kind: output, shape index: {}]  }
   0x1   :  { %v4_v0 = vld [vmem:[%s22_s0] ss:$0 sm:$0xff] }
   0x2   :  { %5 = vst [vmem:[%s23_s1] sm:$0x3] %v4_v0 }

// kernel: residual_block.1
= control target key start
LH: loop header
LB: loop body
LE: loop exit
PB: predicated region body
PF: predicated region fallthrough
CT: control target
= control target key end

     0   :  { %s461_s23 = smov 112   ;;  %s462_s24 = smov 111   ;;  %v466_v2 = vmov 0.0   ;;  %v468_v3 = vmov 0   ;;  %v29_v5 = vlaneseq  ;;  %vm209_vm8 = vcmask 588800   ;;  %s770_s0 = inlined_call_operand.vmem [shape: f32[8,256], index: 0, kind: input, shape index: {}]   ;;  %s771_s2 = inlined_call_operand.vmem [shape: f32[8,1], index: 2, kind: input, shape index: {}]   ;;  %s772_s5 = inlined_call_operand.vmem [shape: f32[9,1,256], index: 5, kind: input, shape index: {}]   ;;  %s773_s1 = inlined_call_operand.vmem [shape: f32[8,72], index: 1, kind: input, shape index: {}]   ;;  %s774_s4 = inlined_call_operand.vmem [shape: f32[8,1], index: 4, kind: input, shape index: {}]   ;;  %s775_s3 = inlined_call_operand.vmem [shape: f32[8,72], index: 3, kind: input, shape index: {}]   ;;  %s776_s6 = inlined_call_operand.vmem [shape: f32[8,256], index: 6, kind: output, shape index: {}]  }
   0x1   :  { %v509_v0 = vld [vmem:[%s770_s0] sm:$0xff]  ;;  %v518_v1 = vld [vmem:[%s770_s0 + $0x8] sm:$0xff]  ;;  %s463_s27 = smov 113   ;;  %s464_s28 = smov 127   ;;  %277 = vmatprep.mubr.f32.mxu0 %v466_v2  ;;  %424 = vmatprep.mubr.f32.mxu1 %v466_v2  ;;  %v447_v10 = vld [vmem:[%s772_s5 + $0x10] sm:$0x3] }
   0x2   :  { %158 = vrot.lane.b32.xlu1 %v509_v0, %s461_s23  ;;  %180 = vrot.lane.b32.xlu0 %v509_v0, %s462_s24  ;;  %s465_s0 = smov 1   ;;  %s467_s29 = smov 15   ;;  %v203_v4 = vld [vmem:[%s771_s2] sm:$0xff]  ;;  %v37_v6 = vshrl.u32 %v29_v5, 7  ;;  %v551_v7 = vand.u32 127, %v29_v5 }
   0x3   :  { %460 = vset.pattern.permute.xlu0 %v468_v3  ;;  %s469_s30 = smov 16   ;;  %s470_s7 = smov 17   ;;  %v446_v13 = vld [vmem:[%s772_s5 + $0xe] sm:$0x3]  ;;  %v445_v15 = vld [vmem:[%s772_s5 + $0xc] sm:$0x3] }
   0x4   :  { %v553_v8 = vsub.s32 0, %v37_v6  ;;  %v555_v9 = vsub.s32 1, %v37_v6  ;;  %vm162_vm0 = vcmp.lt.s32.totalorder %v551_v7, 112  ;;  %vm184_vm1 = vcmp.lt.s32.totalorder %v551_v7, 111  ;;  %v444_v29 = vld [vmem:[%s772_s5 + $0xa] sm:$0x3] }
   0x5   :  { %vm140_vm2 = vcmp.lt.s32.totalorder %v551_v7, 113  ;;  %vm118_vm3 = vcmp.lt.s32.totalorder %v551_v7, 127  ;;  %v443_v40 = vld [vmem:[%s772_s5 + $0x6] sm:$0x3]  ;;  %vm96_vm4 = vcmp.lt.s32.totalorder %v551_v7, 1  ;;  %vm74_vm5 = vcmp.lt.s32.totalorder %v551_v7, 15 }
   0x6   :  { %160 = vrot.lane.b32.xlu1 %v518_v1, %s461_s23  ;;  %182 = vrot.lane.b32.xlu0 %v518_v1, %s462_s24  ;;  %v566_v14 = vrot.slane %v447_v10, %v555_v9  ;;  %v572_v16 = vrot.slane %v447_v10, %v553_v8  ;;  %v575_v17 = vrot.slane %v446_v13, %v553_v8  ;;  %v442_v49 = vld [vmem:[%s772_s5 + $0x4] sm:$0x3]  ;;  %v441_v58 = vld [vmem:[%s772_s5 + $0x2] sm:$0x3]  ;;  %vm52_vm6 = vcmp.lt.s32.totalorder %v551_v7, 16 }
   0x7   :  { %v578_v18 = vrot.slane %v446_v13, %v555_v9  ;;  %v588_v24 = vrot.slane %v445_v15, %v553_v8  ;;  %v594_v27 = vrot.slane %v445_v15, %v555_v9  ;;  %v610_v38 = vrot.slane %v444_v29, %v553_v8  ;;  %v34_v5 = vld [vmem:[%s772_s5] sm:$0x3] }
   0x8   :  { %v613_v39 = vrot.slane %v444_v29, %v555_v9  ;;  %v626_v47 = vrot.slane %v443_v40, %v553_v8  ;;  %v629_v48 = vrot.slane %v443_v40, %v555_v9  ;;  %v643_v56 = vrot.slane %v442_v49, %v553_v8 }
   0x9   :  { %v646_v57 = vrot.slane %v442_v49, %v555_v9  ;;  %v660_v3 = vrot.slane %v441_v58, %v553_v8  ;;  %vm31_vm7 = vcmp.lt.s32.totalorder %v551_v7, 17 }
   0xa   :  { %138 = vrot.lane.b32.xlu1 %v518_v1, %s463_s27  ;;  %136 = vrot.lane.b32.xlu0 %v509_v0, %s463_s27 }
   0xe   :  { %116 = vrot.lane.b32.xlu1 %v518_v1, %s464_s28  ;;  %114 = vrot.lane.b32.xlu0 %v509_v0, %s464_s28 }
  0x12   :  { %94 = vrot.lane.b32.xlu1 %v518_v1, %s465_s0  ;;  %92 = vrot.lane.b32.xlu0 %v509_v0, %s465_s0 }
  0x16   :  { %72 = vrot.lane.b32.xlu1 %v518_v1, %s467_s29  ;;  %70 = vrot.lane.b32.xlu0 %v509_v0, %s467_s29 }
  0x1a   :  { %50 = vrot.lane.b32.xlu1 %v518_v1, %s469_s30  ;;  %48 = vrot.lane.b32.xlu0 %v509_v0, %s469_s30 }
  0x1e   :  { %27 = vrot.lane.b32.xlu1 %v518_v1, %s470_s7  ;;  %25 = vrot.lane.b32.xlu0 %v509_v0, %s470_s7 }
  0x22   :  { %206 = vperm.xlu0 %460, %v203_v4   ;;  %v663_v4 = vrot.slane %v441_v58, %v555_v9 }
  0x74   :  { %v159_v11 = vpop.permute.xlu1 %158  ;;  %v181_v12 = vpop.permute.xlu0 %180 }
  0x78   :  { %v161_v19 = vpop.permute.xlu1 %160  ;;  %v183_v20 = vpop.permute.xlu0 %182 }
  0x79   :  { %v164_v21 = vsel %vm162_vm0, %v161_v19, %v159_v11  ;;  %v185_v22 = vsel %vm184_vm1, %v181_v12, %v183_v20  ;;  %v186_v23 = vsel %vm184_vm1, %v183_v20, %v181_v12  ;;  %v163_v25 = vsel %vm162_vm0, %v159_v11, %v161_v19 }
  0x7a   :  { %v201_v26 = vmul.f32 %v566_v14, %v186_v23  ;;  %v200_v28 = vmul.f32 %v572_v16, %v185_v22  ;;  %v179_v30 = vmul.f32 %v578_v18, %v164_v21  ;;  %v178_v33 = vmul.f32 %v575_v17, %v163_v25 }
  0x7b   :  { %v676_v19 = vrot.slane %v34_v5, %v553_v8  ;;  %v679_v20 = vrot.slane %v34_v5, %v555_v9  ;;  %v202_v8 = vld [vmem:[%s773_s1] sm:$0xff] }
  0x7c   :  { %v139_v31 = vpop.permute.xlu1 %138  ;;  %227 = vmatprep.subr.mxu0 %v201_v26  ;;  %v137_v32 = vpop.permute.xlu0 %136 }
  0x7d   :  { %v141_v34 = vsel %vm140_vm2, %v137_v32, %v139_v31  ;;  %v142_v35 = vsel %vm140_vm2, %v139_v31, %v137_v32  ;;  %228 = vmatpush1.msra.mxu0 %v200_v28 }
  0x7e   :  { %v156_v36 = vmul.f32 %v588_v24, %v141_v34  ;;  %v157_v37 = vmul.f32 %v594_v27, %v142_v35  ;;  %229 = vmatprep.subr.mxu0 %v179_v30  ;;  %v351_v35 = vld [vmem:[%s774_s4] sm:$0xff] }
  0x7f   :  { %230 = vmatpush1.msra.mxu0 %v178_v33 }
  0x80   :  { %v117_v41 = vpop.permute.xlu1 %116  ;;  %231 = vmatprep.subr.mxu0 %v157_v37  ;;  %v115_v42 = vpop.permute.xlu0 %114 }
  0x81   :  { %v119_v43 = vsel %vm118_vm3, %v115_v42, %v117_v41  ;;  %v120_v44 = vsel %vm118_vm3, %v117_v41, %v115_v42  ;;  %232 = vmatpush1.msra.mxu0 %v156_v36 }
  0x82   :  { %v134_v45 = vmul.f32 %v610_v38, %v119_v43  ;;  %v135_v46 = vmul.f32 %v613_v39, %v120_v44 }
  0x84   :  { %v95_v50 = vpop.permute.xlu1 %94  ;;  %233 = vmatprep.subr.mxu0 %v135_v46  ;;  %v93_v51 = vpop.permute.xlu0 %92 }
  0x85   :  { %v97_v52 = vsel %vm96_vm4, %v93_v51, %v95_v50  ;;  %v98_v53 = vsel %vm96_vm4, %v95_v50, %v93_v51  ;;  %234 = vmatpush1.msra.mxu0 %v134_v45 }
  0x86   :  { %v112_v54 = vmul.f32 %v626_v47, %v98_v53  ;;  %v113_v55 = vmul.f32 %v629_v48, %v97_v52  ;;  %235 = vmatprep.subr.mxu0 %v518_v1 }
  0x87   :  { %236 = vmatpush1.msra.mxu0 %v509_v0 }
  0x88   :  { %v73_v59 = vpop.permute.xlu1 %72  ;;  %237 = vmatprep.subr.mxu0 %v113_v55  ;;  %v71_v60 = vpop.permute.xlu0 %70 }
  0x89   :  { %v75_v61 = vsel %vm74_vm5, %v71_v60, %v73_v59  ;;  %v76_v62 = vsel %vm74_vm5, %v73_v59, %v71_v60  ;;  %238 = vmatpush1.msra.mxu0 %v112_v54 }
  0x8a   :  { %v90_v63 = vmul.f32 %v643_v56, %v76_v62  ;;  %v91_v2 = vmul.f32 %v646_v57, %v75_v61 }
  0x8c   :  { %v51_v6 = vpop.permute.xlu1 %50  ;;  %239 = vmatprep.subr.mxu0 %v91_v2  ;;  %v49_v10 = vpop.permute.xlu0 %48 }
  0x8d   :  { %v53_v11 = vsel %vm52_vm6, %v49_v10, %v51_v6  ;;  %v54_v12 = vsel %vm52_vm6, %v51_v6, %v49_v10  ;;  %240 = vmatpush1.msra.mxu0 %v90_v63 }
  0x8e   :  { %v68_v13 = vmul.f32 %v660_v3, %v54_v12  ;;  %v69_v15 = vmul.f32 %v663_v4, %v53_v11 }
  0x90   :  { %v28_v21 = vpop.permute.xlu1 %27  ;;  %241 = vmatprep.subr.mxu0 %v69_v15  ;;  %v26_v22 = vpop.permute.xlu0 %25 }
  0x91   :  { %v32_v23 = vsel %vm31_vm7, %v26_v22, %v28_v21  ;;  %v33_v25 = vsel %vm31_vm7, %v28_v21, %v26_v22  ;;  %242 = vmatpush1.msra.mxu0 %v68_v13 }
  0x92   :  { %v46_v26 = vmul.f32 %v676_v19, %v33_v25  ;;  %v47_v28 = vmul.f32 %v679_v20, %v32_v23 }
  0x94   :  { %243 = vmatprep.subr.mxu0 %v47_v28 }
  0x95   :  { %244 = vmatpush1.msra.mxu0 %v46_v26 }
  0x96   :  { %448 = vmatmul.mubr.msk.f32.vlgmr.msra.gmra.mxu0 %vm209_vm8, %v202_v8 }
  0x9d   :  { %v207_v9 = vpop.permute.xlu0 %206 }
 0x156   :  { %v279_v29 = vpop.f32.mrf.mxu0 }
 0x157   :  { %v280_v30 = vadd.f32 %v279_v29, %v207_v9 }
 0x158   :  { %v281_v31 = vpop.f32.mrf.mxu0 }
 0x159   :  { %v284_v32 = vmax.f32 %v280_v30, 0.0  ;;  %v282_v33 = vadd.f32 %v281_v31, %v207_v9 }
 0x15b   :  { %334 = vrot.lane.b32.xlu0 %v284_v32, %s461_s23  ;;  %342 = vrot.lane.b32.xlu1 %v284_v32, %s462_s24  ;;  %v285_v34 = vmax.f32 %v282_v33, 0.0 }
 0x15f   :  { %326 = vrot.lane.b32.xlu0 %v284_v32, %s463_s27  ;;  %344 = vrot.lane.b32.xlu1 %v285_v34, %s462_s24 }
 0x163   :  { %318 = vrot.lane.b32.xlu0 %v284_v32, %s464_s28  ;;  %336 = vrot.lane.b32.xlu1 %v285_v34, %s461_s23 }
 0x167   :  { %310 = vrot.lane.b32.xlu0 %v284_v32, %s465_s0  ;;  %328 = vrot.lane.b32.xlu1 %v285_v34, %s463_s27 }
 0x16b   :  { %302 = vrot.lane.b32.xlu0 %v284_v32, %s467_s29  ;;  %320 = vrot.lane.b32.xlu1 %v285_v34, %s464_s28 }
 0x16f   :  { %294 = vrot.lane.b32.xlu0 %v284_v32, %s469_s30  ;;  %312 = vrot.lane.b32.xlu1 %v285_v34, %s465_s0 }
 0x173   :  { %286 = vrot.lane.b32.xlu0 %v284_v32, %s470_s7  ;;  %304 = vrot.lane.b32.xlu1 %v285_v34, %s467_s29 }
 0x177   :  { %354 = vperm.xlu0 %460, %v351_v35   ;;  %296 = vrot.lane.b32.xlu1 %v285_v34, %s469_s30 }
 0x17b   :  { %288 = vrot.lane.b32.xlu1 %v285_v34, %s470_s7 }
 0x1cd   :  { %v335_v36 = vpop.permute.xlu0 %334  ;;  %v343_v37 = vpop.permute.xlu1 %342 }
 0x1d1   :  { %v327_v40 = vpop.permute.xlu0 %326  ;;  %v345_v41 = vpop.permute.xlu1 %344 }
 0x1d2   :  { %v346_v42 = vsel %vm184_vm1, %v343_v37, %v345_v41  ;;  %v347_v43 = vsel %vm184_vm1, %v345_v41, %v343_v37 }
 0x1d3   :  { %v349_v44 = vmul.f32 %v347_v43, %v566_v14  ;;  %v348_v45 = vmul.f32 %v346_v42, %v572_v16 }
 0x1d5   :  { %v319_v46 = vpop.permute.xlu0 %318  ;;  %374 = vmatprep.subr.mxu1 %v349_v44  ;;  %v337_v49 = vpop.permute.xlu1 %336 }
 0x1d6   :  { %v338_v50 = vsel %vm162_vm0, %v335_v36, %v337_v49  ;;  %v339_v51 = vsel %vm162_vm0, %v337_v49, %v335_v36  ;;  %375 = vmatpush1.msra.mxu1 %v348_v45 }
 0x1d7   :  { %v340_v52 = vmul.f32 %v338_v50, %v575_v17  ;;  %v341_v53 = vmul.f32 %v339_v51, %v578_v18 }
 0x1d9   :  { %376 = vmatprep.subr.mxu1 %v341_v53  ;;  %v329_v54 = vpop.permute.xlu1 %328  ;;  %v311_v55 = vpop.permute.xlu0 %310 }
 0x1da   :  { %v330_v14 = vsel %vm140_vm2, %v327_v40, %v329_v54  ;;  %v331_v16 = vsel %vm140_vm2, %v329_v54, %v327_v40  ;;  %377 = vmatpush1.msra.mxu1 %v340_v52 }
 0x1db   :  { %v332_v58 = vmul.f32 %v330_v14, %v588_v24  ;;  %v333_v59 = vmul.f32 %v331_v16, %v594_v27 }
 0x1dd   :  { %378 = vmatprep.subr.mxu1 %v333_v59  ;;  %v321_v60 = vpop.permute.xlu1 %320  ;;  %v303_v63 = vpop.permute.xlu0 %302 }
 0x1de   :  { %v322_v17 = vsel %vm118_vm3, %v319_v46, %v321_v60  ;;  %v323_v18 = vsel %vm118_vm3, %v321_v60, %v319_v46  ;;  %379 = vmatpush1.msra.mxu1 %v332_v58 }
 0x1df   :  { %v324_v61 = vmul.f32 %v322_v17, %v610_v38  ;;  %v325_v62 = vmul.f32 %v323_v18, %v613_v39 }
 0x1e1   :  { %380 = vmatprep.subr.mxu1 %v325_v62  ;;  %v313_v2 = vpop.permute.xlu1 %312  ;;  %v295_v11 = vpop.permute.xlu0 %294 }
 0x1e2   :  { %v314_v24 = vsel %vm96_vm4, %v311_v55, %v313_v2  ;;  %v315_v27 = vsel %vm96_vm4, %v313_v2, %v311_v55  ;;  %381 = vmatpush1.msra.mxu1 %v324_v61 }
 0x1e3   :  { %v316_v5 = vmul.f32 %v315_v27, %v626_v47  ;;  %v317_v6 = vmul.f32 %v314_v24, %v629_v48  ;;  %382 = vmatprep.subr.mxu1 %v285_v34 }
 0x1e4   :  { %383 = vmatpush1.msra.mxu1 %v284_v32 }
 0x1e5   :  { %384 = vmatprep.subr.mxu1 %v317_v6  ;;  %v305_v38 = vpop.permute.xlu1 %304  ;;  %v287_v23 = vpop.permute.xlu0 %286 }
 0x1e6   :  { %v306_v39 = vsel %vm74_vm5, %v303_v63, %v305_v38  ;;  %v307_v10 = vsel %vm74_vm5, %v305_v38, %v303_v63  ;;  %385 = vmatpush1.msra.mxu1 %v316_v5 }
 0x1e7   :  { %v308_v12 = vmul.f32 %v307_v10, %v643_v56  ;;  %v309_v13 = vmul.f32 %v306_v39, %v646_v57 }
 0x1e9   :  { %386 = vmatprep.subr.mxu1 %v309_v13  ;;  %v297_v47 = vpop.permute.xlu1 %296 }
 0x1ea   :  { %v298_v48 = vsel %vm52_vm6, %v295_v11, %v297_v47  ;;  %v299_v15 = vsel %vm52_vm6, %v297_v47, %v295_v11  ;;  %387 = vmatpush1.msra.mxu1 %v308_v12 }
 0x1eb   :  { %v300_v21 = vmul.f32 %v299_v15, %v660_v3  ;;  %v301_v22 = vmul.f32 %v298_v48, %v663_v4  ;;  %v350_v3 = vld [vmem:[%s775_s3] sm:$0xff] }
 0x1ed   :  { %388 = vmatprep.subr.mxu1 %v301_v22  ;;  %v289_v25 = vpop.permute.xlu1 %288 }
 0x1ee   :  { %v290_v56 = vsel %vm31_vm7, %v287_v23, %v289_v25  ;;  %v291_v57 = vsel %vm31_vm7, %v289_v25, %v287_v23  ;;  %389 = vmatpush1.msra.mxu1 %v300_v21 }
 0x1ef   :  { %v292_v26 = vmul.f32 %v291_v57, %v676_v19  ;;  %v293_v28 = vmul.f32 %v290_v56, %v679_v20 }
 0x1f1   :  { %390 = vmatprep.subr.mxu1 %v293_v28 }
 0x1f2   :  { %391 = vmatpush1.msra.mxu1 %v292_v26  ;;  %v355_v4 = vpop.permute.xlu0 %354 }
 0x1f3   :  { %449 = vmatmul.mubr.msk.f32.vlgmr.msra.gmra.mxu1 %vm209_vm8, %v350_v3 }
 0x2b3   :  { %v426_v8 = vpop.f32.mrf.mxu1 }
 0x2b4   :  { %v427_v9 = vadd.f32 %v426_v8, %v355_v4 }
 0x2b5   :  { %v428_v29 = vpop.f32.mrf.mxu1 }
 0x2b6   :  { %v431_v7 = vadd.f32 %v427_v9, %v509_v0  ;;  %v429_v30 = vadd.f32 %v428_v29, %v355_v4 }
 0x2b8   :  { %v433_v31 = vmax.f32 %v431_v7, 0.0  ;;  %v432_v19 = vadd.f32 %v429_v30, %v518_v1 }
 0x2ba   :  { %435 = vst [vmem:[%s776_s6] sm:$0xff] %v433_v31  ;;  %v434_v20 = vmax.f32 %v432_v19, 0.0 }
 0x2bc   :  { %436 = vst [vmem:[%s776_s6 + $0x8] sm:$0xff] %v434_v20 }

</bundles_post_ra>
